<compile_context>
chip_gen: v7x
topology: tpu7x:2x2x1
jax: 0.10.0
libtpu: 0.0.40
codegen_flags: <defaults>
</compile_context>

<pallas_src>
import functools
import math

import jax
import jax.numpy as jnp
from jax.experimental import pallas as pl
from jax.experimental.pallas import tpu as pltpu


def _round_up(a, b):
    return ((a + b - 1) // b) * b


def _lcm(a, b):
    return a * b // math.gcd(a, b)


def _resblock_kernel(*refs, r, c_out, k, seq_len, conv_shortcut):
    """Fused ResidualBlock tile: conv1(+shortcut) -> ReLU -> conv2 -> add -> ReLU.

    Activation tile is (C_in, T) with T a 128-multiple lane tile; K=3 taps are
    built in-kernel with XLU lane rolls (replicate padding at sequence seams).
    """
    if k == 3:
        x_ref, wc_ref, wl_ref, wr_ref, b1_ref, w2_ref, b2_ref, o_ref = refs
    else:
        x_ref, wc_ref, b1_ref, w2_ref, b2_ref, o_ref = refs

    x = x_ref[...]                                                # (C_in, T)
    # Centre tap (and, for conv shortcut, the stacked shortcut rows) in one dot.
    hcat = jnp.dot(wc_ref[...], x, preferred_element_type=jnp.float32)

    if k == 3:
        t = x.shape[1]
        # Local column index; every (multi-tile) tile starts at a sequence
        # boundary (lane_tile % L == 0 is asserted in the wrapper), so the
        # local iota is congruent to the global column index mod L.
        pos = jax.lax.broadcasted_iota(jnp.int32, x.shape, 1)
        if (seq_len & (seq_len - 1)) == 0:
            l = pos & (seq_len - 1)
        else:
            l = pos % seq_len
        # Neighbour taps via lane rolls (XLU slot, free under a DMA-bound
        # regime); replicate padding at l == 0 / l == L-1 falls back to x.
        left = jnp.where(l == 0, x, pltpu.roll(x, 1, axis=1))
        right = jnp.where(l == seq_len - 1, x, pltpu.roll(x, t - 1, axis=1))
        hcat = hcat + jnp.dot(wl_ref[...], left,
                              preferred_element_type=jnp.float32)
        hcat = hcat + jnp.dot(wr_ref[...], right,
                              preferred_element_type=jnp.float32)

    hcat = hcat + b1_ref[...]                                     # (+bias) f32
    h = jnp.maximum(hcat[:r, :], 0.0)                             # ReLU(conv1)
    left_out = jnp.dot(w2_ref[...], h.astype(x.dtype),
                       preferred_element_type=jnp.float32) + b2_ref[...]
    if conv_shortcut:
        sc = hcat[r:r + c_out, :]           # shortcut rows start at sublane r
    else:
        sc = (x if x.shape[0] == c_out else x[:c_out, :]).astype(jnp.float32)
    o_ref[...] = jnp.maximum(left_out + sc, 0.0).astype(o_ref.dtype)


def _prep_weights(w1, b1, w2, b2, ws, bs, kernel_size, compute_dtype):
    """Flatten conv weights; stack shortcut rows 8-sublane-aligned under conv1."""
    c_out, c_in, _ = w1.shape
    r = _round_up(c_out, 8)                       # sublane-aligned row group
    rows = 2 * r if ws is not None else r

    def embed(tap):
        return jnp.zeros((rows, c_in), compute_dtype).at[:c_out].set(
            tap.astype(compute_dtype))

    if kernel_size == 3:
        # Tap order (centre, left, right) to pair with (x, left_tap, right_tap).
        wc, wl, wr = embed(w1[:, :, 1]), embed(w1[:, :, 0]), embed(w1[:, :, 2])
    else:
        wc, wl, wr = embed(w1[:, :, 0]), None, None

    bcat = jnp.zeros((rows, 1), jnp.float32).at[:c_out].set(
        jnp.asarray(b1, jnp.float32).reshape(c_out, 1))
    if ws is not None:
        # Shortcut conv contracts the centre tap only.
        wc = wc.at[r:r + c_out].set(ws[:, :, 0].astype(compute_dtype))
        bcat = bcat.at[r:r + c_out].set(
            jnp.asarray(bs, jnp.float32).reshape(c_out, 1))

    w2p = jnp.zeros((c_out, r), compute_dtype).at[:, :c_out].set(
        w2[:, :, 0].astype(compute_dtype))
    b2p = jnp.asarray(b2, jnp.float32).reshape(c_out, 1)
    return wc, wl, wr, bcat, w2p, b2p, r, rows


def residual_block_cmajor(x2d, seq_len, w1, b1, w2, b2, ws=None, bs=None,
                          kernel_size=1, use_bf16=False, max_lane_tile=16384):
    """Fused ResidualBlock forward on a channels-major (C_in, N*L) slab.

    Chained blocks should keep activations in this layout (and in bf16 when
    use_bf16=True) so no per-layer relayout / cast passes are paid.
    Returns (C_out, N*L).
    """
    c_in, cols = x2d.shape
    c_out = w1.shape[0]
    k = kernel_size
    if k not in (1, 3):
        raise NotImplementedError("only kernel_size in (1, 3) is supported")
    out_dtype = x2d.dtype
    compute_dtype = jnp.bfloat16 if use_bf16 else x2d.dtype
    conv_shortcut = ws is not None
    if not conv_shortcut and c_in != c_out:
        raise ValueError("identity shortcut requires inchannel == outchannel")

    wc, wl, wr, bcat, w2p, b2p, r, rows = _prep_weights(
        w1, b1, w2, b2, ws, bs, k, compute_dtype)

    if x2d.dtype != compute_dtype:
        # Producers that chain blocks should already keep activations in bf16;
        # this cast is the f32 / PyTorch-layout compatibility path.
        x2d = x2d.astype(compute_dtype)

    # Lane-dense columns: pad only to the next 128 multiple (never to the full
    # lane tile) so stores stay unmasked without an extra full-slab copy.
    cols_p = _round_up(cols, 128)
    if cols_p != cols:
        x2d = jnp.pad(x2d, ((0, 0), (0, cols_p - cols)))

    # For K=3 the in-kernel roll im2col needs every multi-tile lane tile to
    # start at a sequence boundary, i.e. lane_tile % L == 0 (and % 128 == 0).
    quantum = _lcm(seq_len, 128) if k == 3 else 128

    # VMEM budget: pipelined input/output buffers + in-kernel f32 intermediates.
    itm_c = jnp.dtype(compute_dtype).itemsize
    itm_o = jnp.dtype(out_dtype).itemsize
    per_col = (2 * c_in * itm_c                        # pipelined input buffers
               + (3 * c_in * itm_c if k == 3 else 0)   # left/right taps + select
               + 3 * rows * 4                          # hcat accumulators (f32)
               + rows * (4 + itm_c)                    # relu(h) + cast for dot 2
               + 3 * c_out * 4                         # left branch + add + relu
               + 2 * c_out * itm_o)                    # pipelined output buffers
    try:
        vmem_cap = int(getattr(pltpu.get_tpu_info(), "vmem_capacity_bytes",
                               64 * 1024 * 1024))
    except Exception:
        vmem_cap = 64 * 1024 * 1024
    budget_bytes = min(vmem_cap // 2, 64 * 1024 * 1024)  # 64 MiB v5e/v6e, 32 MiB v7x
    vmem_limit = min(vmem_cap * 3 // 4, 100 * 1024 * 1024)

    lane_tile = max(128, min(max_lane_tile, budget_bytes // per_col))
    lane_tile = max(quantum, lane_tile // quantum * quantum)
    # TODO(synk): pathological combinations (huge lcm(L,128) with huge channel
    # counts) could exceed the VMEM budget; fall back to wrapper-side im2col in
    # that corner if it ever matters.
    if lane_tile >= cols_p:
        if cols_p >= 2 * quantum:
            # Split into >= 2 parallel steps so both v7x TensorCores get work.
            lane_tile = _round_up(pl.cdiv(cols_p, 2), quantum)
        else:
            lane_tile = cols_p
    n_steps = pl.cdiv(cols_p, lane_tile)
    assert k != 3 or n_steps == 1 or lane_tile % seq_len == 0

    kernel = functools.partial(_resblock_kernel, r=r, c_out=c_out, k=k,
                               seq_len=seq_len, conv_shortcut=conv_shortcut)
    act_spec = pl.BlockSpec((c_in, lane_tile), lambda i: (0, i))
    out_spec = pl.BlockSpec((c_out, lane_tile), lambda i: (0, i))
    const = lambda a: pl.BlockSpec(a.shape, lambda i: (0, 0))  # grid-invariant

    if k == 3:
        operands = (x2d, wc, wl, wr, bcat, w2p, b2p)
    else:
        operands = (x2d, wc, bcat, w2p, b2p)
    in_specs = [act_spec] + [const(op) for op in operands[1:]]

    taps = 3 if k == 3 else 1
    flops = 2 * cols_p * (rows * c_in * taps + c_out * r) + 6 * cols_p * c_out
    bytes_accessed = (x2d.size * itm_c + c_out * cols_p * itm_o
                      + taps * rows * c_in * itm_c + rows * 4
                      + c_out * r * itm_c + c_out * 4)

    out2d = pl.pallas_call(
        kernel,
        out_shape=jax.ShapeDtypeStruct((c_out, cols_p), out_dtype),
        grid_spec=pltpu.PrefetchScalarGridSpec(
            num_scalar_prefetch=0,
            grid=(n_steps,),
            in_specs=in_specs,
            out_specs=out_spec,
        ),
        compiler_params=pltpu.CompilerParams(
            dimension_semantics=("parallel",),
            vmem_limit_bytes=int(vmem_limit),
        ),
        cost_estimate=pl.CostEstimate(flops=int(flops), transcendentals=0,
                                      bytes_accessed=int(bytes_accessed)),
    )(*operands)
    return out2d[:, :cols]


@functools.partial(jax.jit, static_argnames=("kernel_size", "use_bf16"))
def residual_block(x, w1, b1, w2, b2, ws=None, bs=None, kernel_size=1,
                   use_bf16=False):
    """PyTorch-layout adapter: x (N, C_in, L) -> (N, C_out, L).

    The (N,C,L) <-> (C, N*L) relayout is paid once here (layout plumbing);
    chained blocks should call residual_block_cmajor directly.
    """
    n, c_in, seq_len = x.shape
    c_out = w1.shape[0]
    x2d = x.transpose(1, 0, 2).reshape(c_in, n * seq_len)
    out2d = residual_block_cmajor(x2d, seq_len, w1, b1, w2, b2, ws, bs,
                                  kernel_size=kernel_size, use_bf16=use_bf16)
    return out2d.reshape(c_out, n, seq_len).transpose(1, 0, 2)


def init_params(key, inchannel, outchannel, kernel_size=1):
    """Deterministic synthetic params mirroring nn.Conv1d default init shapes."""
    ks = jax.random.split(key, 6)

    def u(k, shape, fan_in):
        bound = 1.0 / jnp.sqrt(float(fan_in))
        return jax.random.uniform(k, shape, jnp.float32, -bound, bound)

    w1 = u(ks[0], (outchannel, inchannel, kernel_size), inchannel * kernel_size)
    b1 = u(ks[1], (outchannel, 1), inchannel * kernel_size)
    w2 = u(ks[2], (outchannel, outchannel, 1), outchannel)
    b2 = u(ks[3], (outchannel, 1), outchannel)
    if inchannel != outchannel:
        ws = u(ks[4], (outchannel, inchannel, 1), inchannel)
        bs = u(ks[5], (outchannel, 1), inchannel)
    else:
        ws = None  # nn.Sequential() identity shortcut
        bs = None
    return w1, b1, w2, b2, ws, bs


def ref_forward(x, w1, b1, w2, b2, ws=None, bs=None, kernel_size=1):
    """Pure-JAX reference matching the PyTorch forward."""
    dn = ('NCH', 'OIH', 'NCH')
    if kernel_size == 3:
        x_in = jnp.concatenate([x[:, :, :1], x, x[:, :, -1:]], axis=-1)
    else:
        x_in = x
    h = jax.lax.conv_general_dilated(x_in, w1, (1,), 'VALID', dimension_numbers=dn)
    h = jnp.maximum(h + b1[None], 0.0)
    left = jax.lax.conv_general_dilated(h, w2, (1,), 'VALID',
                                        dimension_numbers=dn) + b2[None]
    if ws is None:
        sc = x
    else:
        sc = jax.lax.conv_general_dilated(x, ws, (1,), 'VALID',
                                          dimension_numbers=dn) + bs[None]
    return jnp.maximum(left + sc, 0.0)


if __name__ == "__main__":
    key = jax.random.PRNGKey(0)
    kx, kx3, kp1, kp2, kp3 = jax.random.split(key, 5)

    N, C_in, C_out, L = 2, 4, 8, 16
    x = jax.random.normal(kx, (N, C_in, L), jnp.float32)

    # case 1: kernel_size=1, conv shortcut (C_in != C_out), single lane tile.
    p1 = init_params(kp1, C_in, C_out, kernel_size=1)
    out1 = residual_block(x, *p1, kernel_size=1)
    jax.block_until_ready(out1)
    ref1 = ref_forward(x, *p1, kernel_size=1)
    assert out1.shape == (N, C_out, L)
    assert jnp.allclose(out1, ref1, atol=1e-5, rtol=1e-5)

    # case 2: kernel_size=3 (replicate pad, in-kernel im2col), identity shortcut.
    p2 = init_params(kp2, C_in, C_in, kernel_size=3)
    out2 = residual_block(x, *p2, kernel_size=3)
    jax.block_until_ready(out2)
    ref2 = ref_forward(x, *p2, kernel_size=3)
    assert out2.shape == (N, C_in, L)
    assert jnp.allclose(out2, ref2, atol=1e-5, rtol=1e-5)

    # case 3: kernel_size=3, conv shortcut, larger batch -> multi-step parallel
    # grid (exercises the in-kernel roll seam masking across lane tiles).
    N3 = 32
    x3 = jax.random.normal(kx3, (N3, C_in, L), jnp.float32)
    p3 = init_params(kp3, C_in, C_out, kernel_size=3)
    out3 = residual_block(x3, *p3, kernel_size=3)
    jax.block_until_ready(out3)
    ref3 = ref_forward(x3, *p3, kernel_size=3)
    assert out3.shape == (N3, C_out, L)
    assert jnp.allclose(out3, ref3, atol=1e-5, rtol=1e-5)

    # case 4: bf16 matmul inputs (v6e/v7x bandwidth optimization), f32 epilogue.
    out4 = residual_block(x3, *p3, kernel_size=3, use_bf16=True)
    jax.block_until_ready(out4)
    assert jnp.allclose(out4, ref3, atol=5e-2, rtol=5e-2)

    print("KERNEL_OK")
</pallas_src>

<mosaic_0001>
module attributes {stable_mosaic.version = 11 : i64} {
  func.func @_resblock_kernel(%arg0: i32, %arg1: memref<4x128xf32, #tpu.memory_space<vmem>>, %arg2: memref<16x4xf32, #tpu.memory_space<vmem>>, %arg3: memref<16x1xf32, #tpu.memory_space<vmem>>, %arg4: memref<8x8xf32, #tpu.memory_space<vmem>>, %arg5: memref<8x1xf32, #tpu.memory_space<vmem>>, %arg6: memref<8x128xf32, #tpu.memory_space<vmem>>) attributes {dimension_semantics = [#tpu.dimension_semantics<parallel>], iteration_bounds = array<i64: 1>, scalar_prefetch = 0 : i64, scratch_operands = 0 : i64, tpu.core_type = #tpu.core_type<tc>, window_params = [{transform_indices = @transform_0, window_bounds = array<i64: 4, 128>}, {pipeline_mode = #tpu.pipeline_mode<synchronous>, transform_indices = @transform_1, window_bounds = array<i64: 16, 4>}, {pipeline_mode = #tpu.pipeline_mode<synchronous>, transform_indices = @transform_2, window_bounds = array<i64: 16, 1>}, {pipeline_mode = #tpu.pipeline_mode<synchronous>, transform_indices = @transform_3, window_bounds = array<i64: 8, 8>}, {pipeline_mode = #tpu.pipeline_mode<synchronous>, transform_indices = @transform_4, window_bounds = array<i64: 8, 1>}, {transform_indices = @transform_5, window_bounds = array<i64: 8, 128>}]} {
    %c0 = arith.constant 0 : index
    %c0_0 = arith.constant 0 : index
    %0 = vector.load %arg1[%c0, %c0_0] : memref<4x128xf32, #tpu.memory_space<vmem>>, vector<4x128xf32>
    %c0_1 = arith.constant 0 : index
    %c0_2 = arith.constant 0 : index
    %1 = vector.load %arg2[%c0_1, %c0_2] : memref<16x4xf32, #tpu.memory_space<vmem>>, vector<16x4xf32>
    %cst = arith.constant dense<0.000000e+00> : vector<16x128xf32>
    %2 = tpu.matmul %1, %0, %cst {dimension_numbers = #tpu.dot_dimension_numbers<[1], [0], [0], [1], [0, 0, 1, 1], [], []>} : vector<16x4xf32>, vector<4x128xf32>, vector<16x128xf32> -> vector<16x128xf32>
    %c0_3 = arith.constant 0 : index
    %c0_4 = arith.constant 0 : index
    %3 = vector.load %arg3[%c0_3, %c0_4] : memref<16x1xf32, #tpu.memory_space<vmem>>, vector<16x1xf32>
    %4 = vector.broadcast %3 : vector<16x1xf32> to vector<16x128xf32>
    %5 = arith.addf %2, %4 : vector<16x128xf32>
    %6 = vector.extract_strided_slice %5 {offsets = [0, 0], sizes = [8, 128], strides = [1, 1]} : vector<16x128xf32> to vector<8x128xf32>
    %cst_5 = arith.constant 0.000000e+00 : f32
    %7 = vector.broadcast %cst_5 : f32 to vector<8x128xf32>
    %8 = arith.maximumf %6, %7 : vector<8x128xf32>
    %c0_6 = arith.constant 0 : index
    %c0_7 = arith.constant 0 : index
    %9 = vector.load %arg4[%c0_6, %c0_7] : memref<8x8xf32, #tpu.memory_space<vmem>>, vector<8x8xf32>
    %cst_8 = arith.constant dense<0.000000e+00> : vector<8x128xf32>
    %10 = tpu.matmul %9, %8, %cst_8 {dimension_numbers = #tpu.dot_dimension_numbers<[1], [0], [0], [1], [0, 0, 1, 1], [], []>} : vector<8x8xf32>, vector<8x128xf32>, vector<8x128xf32> -> vector<8x128xf32>
    %c0_9 = arith.constant 0 : index
    %c0_10 = arith.constant 0 : index
    %11 = vector.load %arg5[%c0_9, %c0_10] : memref<8x1xf32, #tpu.memory_space<vmem>>, vector<8x1xf32>
    %12 = vector.broadcast %11 : vector<8x1xf32> to vector<8x128xf32>
    %13 = arith.addf %10, %12 : vector<8x128xf32>
    %14 = vector.extract_strided_slice %5 {offsets = [8, 0], sizes = [8, 128], strides = [1, 1]} : vector<16x128xf32> to vector<8x128xf32>
    %15 = arith.addf %13, %14 : vector<8x128xf32>
    %cst_11 = arith.constant 0.000000e+00 : f32
    %16 = vector.broadcast %cst_11 : f32 to vector<8x128xf32>
    %17 = arith.maximumf %15, %16 : vector<8x128xf32>
    %c0_12 = arith.constant 0 : index
    %c0_13 = arith.constant 0 : index
    %18 = vector.load %arg6[%c0_12, %c0_13] : memref<8x128xf32, #tpu.memory_space<vmem>>, vector<8x128xf32>
    tpu.vector_store %arg6[%c0_12, %c0_13], %17 {strides = array<i32>} : memref<8x128xf32, #tpu.memory_space<vmem>>, vector<8x128xf32>,
    return
  }
  func.func @transform_0(%arg0: i32) -> (i32, i32) {
    %c0_i32 = arith.constant 0 : i32
    %c0_i32_0 = arith.constant 0 : i32
    return %c0_i32, %arg0 : i32, i32
  }
  func.func @transform_1(%arg0: i32) -> (i32, i32) {
    %c0_i32 = arith.constant 0 : i32
    %c0_i32_0 = arith.constant 0 : i32
    %c0_i32_1 = arith.constant 0 : i32
    return %c0_i32, %c0_i32_0 : i32, i32
  }
  func.func @transform_2(%arg0: i32) -> (i32, i32) {
    %c0_i32 = arith.constant 0 : i32
    %c0_i32_0 = arith.constant 0 : i32
    %c0_i32_1 = arith.constant 0 : i32
    return %c0_i32, %c0_i32_0 : i32, i32
  }
  func.func @transform_3(%arg0: i32) -> (i32, i32) {
    %c0_i32 = arith.constant 0 : i32
    %c0_i32_0 = arith.constant 0 : i32
    %c0_i32_1 = arith.constant 0 : i32
    return %c0_i32, %c0_i32_0 : i32, i32
  }
  func.func @transform_4(%arg0: i32) -> (i32, i32) {
    %c0_i32 = arith.constant 0 : i32
    %c0_i32_0 = arith.constant 0 : i32
    %c0_i32_1 = arith.constant 0 : i32
    return %c0_i32, %c0_i32_0 : i32, i32
  }
  func.func @transform_5(%arg0: i32) -> (i32, i32) {
    %c0_i32 = arith.constant 0 : i32
    %c0_i32_0 = arith.constant 0 : i32
    return %c0_i32, %arg0 : i32, i32
  }
}

</mosaic_0001>

<bundles_post_ra>
// kernel: residual_block.1
= control target key start
LH: loop header
LB: loop body
LE: loop exit
PB: predicated region body
PF: predicated region fallthrough
CT: control target
= control target key end

     0   :  { %vm42_vm0 = vcmask 1043456   ;;  %vm35_vm1 = vcmask 31744   ;;  %v234_v3 = vmov 0   ;;  %v235_v6 = vmov 0.0   ;;  %s291_s0 = inlined_call_operand.vmem [shape: f32[4,128], index: 0, kind: input, shape index: {}]   ;;  %s292_s1 = inlined_call_operand.vmem [shape: f32[16,4], index: 1, kind: input, shape index: {}]   ;;  %s293_s2 = inlined_call_operand.vmem [shape: f32[16,1], index: 2, kind: input, shape index: {}]   ;;  %s294_s4 = inlined_call_operand.vmem [shape: f32[8,1], index: 4, kind: input, shape index: {}]   ;;  %s295_s3 = inlined_call_operand.vmem [shape: f32[8,8], index: 3, kind: input, shape index: {}]   ;;  %s296_s5 = inlined_call_operand.vmem [shape: f32[8,128], index: 5, kind: output, shape index: {}]  }
   0x1   :  { %v20_v0 = vld [vmem:[%s291_s0] sm:$0xf]  ;;  %v22_v2 = vld [vmem:[%s292_s1 + $0x8] sm:$0xff]  ;;  %232 = vset.pattern.permute.xlu0 %v234_v3  ;;  %233 = vset.pattern.permute.xlu1 %v234_v3  ;;  %vm236_vm2 = vmmov 0   ;;  %vm129_vm3 = vcmask 64512  }
   0x2   :  { %v21_v1 = vld [vmem:[%s292_s1] sm:$0xff]  ;;  %219 = vmatprep.subr.msk.mxu0 %vm42_vm0, %v20_v0  ;;  %v24_v5 = vld [vmem:[%s293_s2 + $0x8] sm:$0xff]  ;;  %224 = vmatprep.subr.mxu1 %v235_v6 }
   0x3   :  { %221 = vmatprep.mubr.msk.f32.mxu0 %vm35_vm1, %v21_v1  ;;  %v23_v4 = vld [vmem:[%s293_s2] sm:$0xff]  ;;  %220 = vmatpush3.msk.msra.mxu0 %vm42_vm0, %v20_v0 }
   0x4   :  { %27 = vperm.xlu0 %232, %v23_v4   ;;  %222 = vmatmul.mubr.msk.f32.vlgmr.msra.gmra.mrb[0].mxu0 %vm35_vm1, %v22_v2  ;;  %v123_v7 = vld [vmem:[%s294_s4] sm:$0xff] }
   0x5   :  { %226 = vmatprep.mubr.msk.f32.mxu1 %vm236_vm2, %v235_v6  ;;  %126 = vperm.xlu1 %233, %v123_v7   ;;  %v122_v13 = vld [vmem:[%s295_s3] sm:$0xff] }
   0x8   :  { %32 = vperm.xlu0 %232, %v24_v5  }
  0x83   :  { %v28_v9 = vpop.permute.xlu0 %27 }
  0x84   :  { %v127_v15 = vpop.permute.xlu1 %126 }
  0x87   :  { %v33_v14 = vpop.permute.xlu0 %32 }
  0xd7   :  { %v223_v8 = vpop.f32.mrb[0].mxu0 }
  0xd8   :  { %v112_v10 = vpop.f32.mrb[1].mxu0  ;;  %v118_v17 = vadd.f32 %v223_v8, %v33_v14 }
  0xd9   :  { %v113_v11 = vadd.f32 %v112_v10, %v28_v9 }
  0xdb   :  { %v121_v12 = vmax.f32 %v113_v11, 0.0 }
  0xdd   :  { %225 = vmatpush3.msra.mxu1 %v121_v12 }
  0xde   :  { %227 = vmatmul.mubr.msk.f32.vlgmr.msra.gmra.mrb[0].mxu1 %vm129_vm3, %v122_v13 }
 0x1b1   :  { %v199_v16 = vpop.f32.mrb[0].mxu1 }
 0x1b2   :  { %v200_v18 = vadd.f32 %v199_v16, %v127_v15  ;;  %v228_v19 = vpop.f32.mrb[1].mxu1 }
 0x1b4   :  { %v203_v20 = vadd.f32 %v200_v18, %v118_v17 }
 0x1b6   :  { %v204_v21 = vmax.f32 %v203_v20, 0.0 }
 0x1b8   :  { %205 = vst [vmem:[%s296_s5] sm:$0xff] %v204_v21 }

</bundles_post_ra>
